<compile_context>
chip_gen: v5e
topology: v5e:2x2
jax: 0.10.0
libtpu: 0.0.40
codegen_flags: <defaults>
</compile_context>

<pallas_src>
import functools

import jax
import jax.numpy as jnp
import numpy as np
from jax import lax
from jax.experimental import pallas as pl
from jax.experimental.pallas import tpu as pltpu


def _upsample_kernel(x_ref, xh_ref, w1_ref, wt_ref, b1_ref, b0_ref, o_ref):
    f32 = jnp.float32
    _, TH, W, Cin = x_ref.shape
    C = wt_ref.shape[1] // 9                       # Cout
    odt = o_ref.dtype
    dot = functools.partial(jnp.dot, preferred_element_type=f32)

    # ---- stage 1: 1x1 conv through the Cmid bottleneck (bias added in f32) ----
    xb = x_ref[0].reshape(TH * W, Cin)
    h = (dot(xb, w1_ref[...]) + b1_ref[...]).astype(jnp.bfloat16)       # (THW, Cmid)

    # ---- stage 2: all nine fused (tconv-tap @ conv2) matrices in one MXU call ----
    P = dot(h, wt_ref[...]).reshape(TH, W, 9 * C)                       # f32

    # Halo row = first row of the tile below this one.  At the bottom of the image its
    # contribution must be exactly zero, so gate it with hv.  It reuses static slices
    # of the already-resident fused weight (down-taps {1,2,0} live in columns [6C:9C)).
    not_last = pl.program_id(1) < pl.num_programs(1) - 1
    hv = not_last.astype(f32)
    hh = (dot(xh_ref[0, 0], w1_ref[...]) + b1_ref[...]).astype(jnp.bfloat16)
    Ph = dot(hh, wt_ref[:, 6 * C:]) * hv                                # (W, 3*C)

    b0 = b0_ref[...]                               # (1, Cout): fused tconv+conv2 bias

    def shift_right(q):          # q'[i, j] = q[i, j+1]; zero past the right image edge
        return jnp.concatenate([q[:, 1:, :], jnp.zeros_like(q[:, :1, :])], axis=1)

    def shift_down(q, qh):       # q'[i, j] = q[i+1, j]; halo row below the tile
        return jnp.concatenate([q[1:, :, :], qh[None]], axis=0)

    # Direct sub-slice stores (no concatenated (TH,W,4C) temporary).  Column parity is
    # packed on the lane axis, row parity on its own axis, so the HBM result is already
    # NHWC up to a free reshape.  Lane sub-slices start at multiples of C -> unmasked
    # full-width vst when Cout % 128 == 0.
    # Column order of P: [F4 | F5 | F7 | F8 | F3 | F6 | F1 | F2 | F0].
    o_ref[0, :, 0, :, 0 * C:1 * C] = (P[:, :, 0 * C:1 * C] + b0).astype(odt)
    o_ref[0, :, 0, :, 1 * C:2 * C] = (P[:, :, 1 * C:2 * C]
                                      + shift_right(P[:, :, 4 * C:5 * C])
                                      + b0).astype(odt)
    o_ref[0, :, 1, :, 0 * C:1 * C] = (P[:, :, 2 * C:3 * C]
                                      + shift_down(P[:, :, 6 * C:7 * C],
                                                   Ph[:, 0 * C:1 * C])
                                      + b0).astype(odt)
    o_ref[0, :, 1, :, 1 * C:2 * C] = (P[:, :, 3 * C:4 * C]
                                      + shift_right(P[:, :, 5 * C:6 * C])
                                      + shift_down(P[:, :, 7 * C:8 * C],
                                                   Ph[:, 1 * C:2 * C])
                                      + shift_right(shift_down(P[:, :, 8 * C:9 * C],
                                                               Ph[:, 2 * C:3 * C]))
                                      + b0).astype(odt)


def _vmem_budget_bytes():
    try:
        cap = int(pltpu.get_tpu_info().vmem_capacity_bytes)
    except Exception:
        cap = 64 * 1024 * 1024          # conservative (v7x-sized) fallback
    return max(32 * 1024 * 1024, min(int(cap * 0.7), 100 * 1024 * 1024))


def _pick_tile_rows(N, H, W, Cin, Cmid, Cout, out_bytes, budget):
    """Channel- and generation-aware H-tile size.

    Budgets the per-tile VMEM footprint (double-buffered bf16 input tile,
    double-buffered output tile, f32 h/P/parity temporaries, resident weights) against
    ~70% of this chip's VMEM, then picks the largest divisor of H that fits while
    keeping >= 4 grid programs so both v7x TensorCores get work (v5e/v6e unaffected).
    """
    fixed = (Cin * Cmid + Cmid * 9 * Cout) * 2 + (Cmid + Cout) * 4       # weights/biases
    fixed += 2 * (W * Cin * 2) + W * 3 * Cout * 4                        # halo row + Ph
    per_row = (2 * W * Cin * 2                     # x tile (bf16, double buffered)
               + 2 * W * 4 * Cout * out_bytes      # output tile (double buffered)
               + W * Cmid * 4                      # h   (f32)
               + W * 9 * Cout * 4                  # P   (f32)
               + W * 4 * Cout * 4)                 # parity temporaries (f32)
    th_cap = max(1, (budget - fixed) // per_row)
    cands = [d for d in range(H, 0, -1) if H % d == 0 and d <= th_cap] or [1]
    for min_programs in (4, 2, 1):
        for d in cands:                            # descending -> largest tile first
            if N * (H // d) >= min_programs:
                return d
    return cands[0]


@functools.partial(jax.jit, static_argnames=("tile_rows", "out_dtype", "data_format"))
def upsample_forward(x_nchw, params, tile_rows=None, out_dtype=jnp.float32,
                     data_format="NCHW"):
    """D-LinkNet UpSample forward.

    Returns (N, Cout, 2H, 2W) for data_format="NCHW" (PyTorch parity) or
    (N, 2H, 2W, Cout) for "NHWC" (epilogue-free: the kernel output reshapes to NHWC
    without any data movement).  out_dtype=jnp.bfloat16 halves the HBM writeback.
    """
    N, Cin, H, W = x_nchw.shape
    Cmid = params["w1"].shape[0]
    Cout = params["w2"].shape[0]
    f32, bf16 = jnp.float32, jnp.bfloat16
    hp = lax.Precision.HIGHEST

    budget = _vmem_budget_bytes()
    out_bytes = np.dtype(out_dtype).itemsize
    TH = tile_rows if tile_rows is not None else _pick_tile_rows(
        N, H, W, Cin, Cmid, Cout, out_bytes, budget)
    assert H % TH == 0, (H, TH)
    nTH = H // TH

    # ---- offline weight prep (exact: the chain is fully linear) ----
    # TODO(synk): pad Cin/Cmid/Cout to multiples of 128 for production channel counts
    # (unmasked MXU / vst); the demo shapes below are left unpadded.
    w1k = params["w1"][:, :, 0, 0].T.astype(f32)                           # (Cin, Cmid)
    wt9 = jnp.transpose(params["wt"], (2, 3, 0, 1)).reshape(9, Cmid, Cmid).astype(f32)
    w2k = params["w2"][:, :, 0, 0].T.astype(f32)                           # (Cmid, Cout)
    T = jnp.einsum("tcd,do->tco", wt9, w2k, precision=hp)                  # (9, Cmid, Cout)

    # Tap order: unshifted {4,5,7,8} -> (ee,eo,oe,oo), right {3,6}, down {1,2}, diag {0}
    tap_order = (4, 5, 7, 8, 3, 6, 1, 2, 0)
    W_taps = jnp.concatenate([T[t] for t in tap_order], axis=1).astype(bf16)  # (Cmid, 9C)
    W1 = w1k.astype(bf16)
    b1 = params["b1"].reshape(1, Cmid).astype(f32)
    b0 = (jnp.dot(params["bt"].reshape(1, Cmid).astype(f32), w2k, precision=hp)
          + params["b2"].reshape(1, Cout).astype(f32))                        # (1, Cout)

    # ---- activations: channels-last bf16 (the only extra HBM pass over the input) ----
    x4 = jnp.transpose(x_nchw, (0, 2, 3, 1)).astype(bf16)                  # (N, H, W, Cin)

    C2 = 2 * Cout
    # Grid-invariant weights/biases: whole-array, single VMEM copy (not pipelined).
    vconst = pl.BlockSpec(memory_space=pltpu.MemorySpace.VMEM)

    grid_spec = pltpu.PrefetchScalarGridSpec(
        num_scalar_prefetch=0,
        grid=(N, nTH),
        in_specs=[
            pl.BlockSpec((1, TH, W, Cin), lambda n, t: (n, t, 0, 0)),
            # One-row halo view of the SAME array (row (t+1)*TH, clamped in-range; its
            # value is irrelevant for the last tile, where the kernel zeroes the
            # contribution) -- no pre-materialized halo array.
            pl.BlockSpec((1, 1, W, Cin),
                         lambda n, t: (n, jnp.minimum((t + 1) * TH, H - 1), 0, 0)),
            vconst, vconst, vconst, vconst,
        ],
        out_specs=pl.BlockSpec((1, TH, 2, W, C2), lambda n, t: (n, t, 0, 0, 0)),
    )

    y = pl.pallas_call(
        _upsample_kernel,
        out_shape=jax.ShapeDtypeStruct((N, H, 2, W, C2), out_dtype),
        grid_spec=grid_spec,
        compiler_params=pltpu.CompilerParams(
            dimension_semantics=("parallel", "parallel"),
            vmem_limit_bytes=int(budget),
        ),
    )(x4, x4, W1, W_taps, b1, b0)

    # (N, H, 2, W, 2*Cout) -> NHWC (N, 2H, 2W, Cout) is a pure (free) reshape.
    nhwc = y.reshape(N, 2 * H, 2 * W, Cout)
    if data_format == "NHWC":
        return nhwc
    return jnp.transpose(nhwc, (0, 3, 1, 2))        # PyTorch NCHW parity


def ref_forward(x, params):
    """Pure-JAX reference with PyTorch (NCHW / OIHW) semantics."""
    dn = ("NCHW", "OIHW", "NCHW")
    hp = lax.Precision.HIGHEST
    h = lax.conv_general_dilated(x, params["w1"], (1, 1), "VALID",
                                 dimension_numbers=dn, precision=hp)
    h = h + params["b1"][None, :, None, None]
    # ConvTranspose2d(k=3, s=2, p=1, op=1) == dilated conv with flipped/swapped weights.
    wt = jnp.flip(jnp.transpose(params["wt"], (1, 0, 2, 3)), axis=(2, 3))
    h = lax.conv_general_dilated(h, wt, (1, 1), ((1, 2), (1, 2)),
                                 lhs_dilation=(2, 2), dimension_numbers=dn,
                                 precision=hp)
    h = h + params["bt"][None, :, None, None]
    h = lax.conv_general_dilated(h, params["w2"], (1, 1), "VALID",
                                 dimension_numbers=dn, precision=hp)
    h = h + params["b2"][None, :, None, None]
    return h


if __name__ == "__main__":
    N, Cin, H, W = 2, 16, 16, 16
    Cout = 8
    Cmid = Cin // 4

    key = jax.random.PRNGKey(0)
    ks = jax.random.split(key, 7)
    params = {
        # PyTorch shapes: conv weights (out,in,kh,kw); ConvTranspose weight (in,out,kh,kw)
        "w1": jax.random.normal(ks[0], (Cmid, Cin, 1, 1), jnp.float32) * 0.2,
        "b1": jax.random.normal(ks[1], (Cmid,), jnp.float32) * 0.05,
        "wt": jax.random.normal(ks[2], (Cmid, Cmid, 3, 3), jnp.float32) * 0.2,
        "bt": jax.random.normal(ks[3], (Cmid,), jnp.float32) * 0.05,
        "w2": jax.random.normal(ks[4], (Cout, Cmid, 1, 1), jnp.float32) * 0.2,
        "b2": jax.random.normal(ks[5], (Cout,), jnp.float32) * 0.05,
    }
    x = jax.random.normal(ks[6], (N, Cin, H, W), jnp.float32)

    ref = jax.block_until_ready(ref_forward(x, params))

    # Explicit multi-tile path (exercises H tiling + the clamped halo-row view).
    out = jax.block_until_ready(upsample_forward(x, params, tile_rows=8))
    assert out.shape == (N, Cout, 2 * H, 2 * W), out.shape
    np.testing.assert_allclose(np.asarray(out), np.asarray(ref), rtol=2e-2, atol=2e-2)

    # Channel/VMEM-aware auto tiling must also match.
    out_auto = jax.block_until_ready(upsample_forward(x, params))
    np.testing.assert_allclose(np.asarray(out_auto), np.asarray(ref), rtol=2e-2, atol=2e-2)

    # Epilogue-free NHWC / bf16 output path (halved HBM writeback).
    out_nhwc = jax.block_until_ready(
        upsample_forward(x, params, out_dtype=jnp.bfloat16, data_format="NHWC"))
    assert out_nhwc.shape == (N, 2 * H, 2 * W, Cout), out_nhwc.shape
    ref_nhwc = np.transpose(np.asarray(ref), (0, 2, 3, 1))
    np.testing.assert_allclose(np.asarray(out_nhwc).astype(np.float32), ref_nhwc,
                               rtol=5e-2, atol=5e-2)

    print("KERNEL_OK")
</pallas_src>

<mosaic_0001>
module attributes {stable_mosaic.version = 11 : i64} {
  func.func @_upsample_kernel(%arg0: i32, %arg1: i32, %arg2: memref<1x8x16x16xbf16, #tpu.memory_space<vmem>>, %arg3: memref<1x1x16x16xbf16, #tpu.memory_space<vmem>>, %arg4: memref<16x4xbf16, #tpu.memory_space<vmem>>, %arg5: memref<4x72xbf16, #tpu.memory_space<vmem>>, %arg6: memref<1x4xf32, #tpu.memory_space<vmem>>, %arg7: memref<1x8xf32, #tpu.memory_space<vmem>>, %arg8: memref<1x8x2x16x16xf32, #tpu.memory_space<vmem>>) attributes {dimension_semantics = [#tpu.dimension_semantics<parallel>, #tpu.dimension_semantics<parallel>], iteration_bounds = array<i64: 2, 2>, scalar_prefetch = 0 : i64, scratch_operands = 0 : i64, tpu.core_type = #tpu.core_type<tc>, window_params = [{transform_indices = @transform_0, window_bounds = array<i64: 1, 8, 16, 16>}, {transform_indices = @transform_1, window_bounds = array<i64: 1, 1, 16, 16>}, {pipeline_mode = #tpu.pipeline_mode<synchronous>, transform_indices = @transform_2, window_bounds = array<i64: 16, 4>}, {pipeline_mode = #tpu.pipeline_mode<synchronous>, transform_indices = @transform_3, window_bounds = array<i64: 4, 72>}, {pipeline_mode = #tpu.pipeline_mode<synchronous>, transform_indices = @transform_4, window_bounds = array<i64: 1, 4>}, {pipeline_mode = #tpu.pipeline_mode<synchronous>, transform_indices = @transform_5, window_bounds = array<i64: 1, 8>}, {transform_indices = @transform_6, window_bounds = array<i64: 1, 8, 2, 16, 16>}]} {
    %c0 = arith.constant 0 : index
    %c0_0 = arith.constant 0 : index
    %c0_1 = arith.constant 0 : index
    %c0_2 = arith.constant 0 : index
    %0 = vector.load %arg2[%c0, %c0_0, %c0_1, %c0_2] : memref<1x8x16x16xbf16, #tpu.memory_space<vmem>>, vector<1x8x16x16xbf16>
    %1 = vector.shape_cast %0 : vector<1x8x16x16xbf16> to vector<8x16x16xbf16>
    %2 = vector.shape_cast %1 : vector<8x16x16xbf16> to vector<128x16xbf16>
    %c0_3 = arith.constant 0 : index
    %c0_4 = arith.constant 0 : index
    %3 = vector.load %arg4[%c0_3, %c0_4] : memref<16x4xbf16, #tpu.memory_space<vmem>>, vector<16x4xbf16>
    %cst = arith.constant dense<0.000000e+00> : vector<128x4xf32>
    %4 = tpu.matmul %2, %3, %cst {dimension_numbers = #tpu.dot_dimension_numbers<[1], [0], [0], [1], [0, 0, 1, 1], [], []>} : vector<128x16xbf16>, vector<16x4xbf16>, vector<128x4xf32> -> vector<128x4xf32>
    %c0_5 = arith.constant 0 : index
    %c0_6 = arith.constant 0 : index
    %5 = vector.load %arg6[%c0_5, %c0_6] : memref<1x4xf32, #tpu.memory_space<vmem>>, vector<1x4xf32>
    %6 = vector.broadcast %5 : vector<1x4xf32> to vector<128x4xf32>
    %7 = arith.addf %4, %6 : vector<128x4xf32>
    %8 = arith.truncf %7 : vector<128x4xf32> to vector<128x4xbf16>
    %c0_7 = arith.constant 0 : index
    %c0_8 = arith.constant 0 : index
    %9 = vector.load %arg5[%c0_7, %c0_8] : memref<4x72xbf16, #tpu.memory_space<vmem>>, vector<4x72xbf16>
    %cst_9 = arith.constant dense<0.000000e+00> : vector<128x72xf32>
    %10 = tpu.matmul %8, %9, %cst_9 {dimension_numbers = #tpu.dot_dimension_numbers<[1], [0], [0], [1], [0, 0, 1, 1], [], []>} : vector<128x4xbf16>, vector<4x72xbf16>, vector<128x72xf32> -> vector<128x72xf32>
    %11 = vector.shape_cast %10 : vector<128x72xf32> to vector<8x16x72xf32>
    %c1_i32 = arith.constant 1 : i32
    %12 = arith.cmpi slt, %arg1, %c1_i32 : i32
    %13 = arith.extui %12 : i1 to i32
    %14 = arith.sitofp %13 : i32 to f32
    %c0_10 = arith.constant 0 : index
    %c0_11 = arith.constant 0 : index
    %c0_12 = arith.constant 0 : index
    %c0_13 = arith.constant 0 : index
    %15 = vector.load %arg3[%c0_10, %c0_11, %c0_12, %c0_13] : memref<1x1x16x16xbf16, #tpu.memory_space<vmem>>, vector<1x1x16x16xbf16>
    %16 = vector.shape_cast %15 : vector<1x1x16x16xbf16> to vector<16x16xbf16>
    %c0_14 = arith.constant 0 : index
    %c0_15 = arith.constant 0 : index
    %17 = vector.load %arg4[%c0_14, %c0_15] : memref<16x4xbf16, #tpu.memory_space<vmem>>, vector<16x4xbf16>
    %cst_16 = arith.constant dense<0.000000e+00> : vector<16x4xf32>
    %18 = tpu.matmul %16, %17, %cst_16 {dimension_numbers = #tpu.dot_dimension_numbers<[1], [0], [0], [1], [0, 0, 1, 1], [], []>} : vector<16x16xbf16>, vector<16x4xbf16>, vector<16x4xf32> -> vector<16x4xf32>
    %c0_17 = arith.constant 0 : index
    %c0_18 = arith.constant 0 : index
    %19 = vector.load %arg6[%c0_17, %c0_18] : memref<1x4xf32, #tpu.memory_space<vmem>>, vector<1x4xf32>
    %20 = vector.broadcast %19 : vector<1x4xf32> to vector<16x4xf32>
    %21 = arith.addf %18, %20 : vector<16x4xf32>
    %22 = arith.truncf %21 : vector<16x4xf32> to vector<16x4xbf16>
    %c0_19 = arith.constant 0 : index
    %c48 = arith.constant 48 : index
    %23 = vector.load %arg5[%c0_19, %c48] : memref<4x72xbf16, #tpu.memory_space<vmem>>, vector<4x24xbf16>
    %cst_20 = arith.constant dense<0.000000e+00> : vector<16x24xf32>
    %24 = tpu.matmul %22, %23, %cst_20 {dimension_numbers = #tpu.dot_dimension_numbers<[1], [0], [0], [1], [0, 0, 1, 1], [], []>} : vector<16x4xbf16>, vector<4x24xbf16>, vector<16x24xf32> -> vector<16x24xf32>
    %25 = vector.broadcast %14 : f32 to vector<16x24xf32>
    %26 = arith.mulf %24, %25 : vector<16x24xf32>
    %c0_21 = arith.constant 0 : index
    %c0_22 = arith.constant 0 : index
    %27 = vector.load %arg7[%c0_21, %c0_22] : memref<1x8xf32, #tpu.memory_space<vmem>>, vector<1x8xf32>
    %28 = vector.extract_strided_slice %11 {offsets = [0, 0, 0], sizes = [8, 16, 8], strides = [1, 1, 1]} : vector<8x16x72xf32> to vector<8x16x8xf32>
    %29 = vector.shape_cast %27 : vector<1x8xf32> to vector<1x1x8xf32>
    %30 = vector.broadcast %29 : vector<1x1x8xf32> to vector<8x16x8xf32>
    %31 = arith.addf %28, %30 : vector<8x16x8xf32>
    %c0_23 = arith.constant 0 : index
    %c0_24 = arith.constant 0 : index
    %c0_25 = arith.constant 0 : index
    %c0_26 = arith.constant 0 : index
    %c0_27 = arith.constant 0 : index
    %32 = vector.load %arg8[%c0_23, %c0_24, %c0_25, %c0_26, %c0_27] : memref<1x8x2x16x16xf32, #tpu.memory_space<vmem>>, vector<1x8x1x16x8xf32>
    %33 = vector.shape_cast %32 : vector<1x8x1x16x8xf32> to vector<8x16x8xf32>
    %34 = vector.shape_cast %31 : vector<8x16x8xf32> to vector<1x8x1x16x8xf32>
    tpu.vector_store %arg8[%c0_23, %c0_24, %c0_25, %c0_26, %c0_27], %34 {strides = array<i32>} : memref<1x8x2x16x16xf32, #tpu.memory_space<vmem>>, vector<1x8x1x16x8xf32>,
    %35 = vector.extract_strided_slice %11 {offsets = [0, 0, 8], sizes = [8, 16, 8], strides = [1, 1, 1]} : vector<8x16x72xf32> to vector<8x16x8xf32>
    %36 = vector.extract_strided_slice %11 {offsets = [0, 0, 32], sizes = [8, 16, 8], strides = [1, 1, 1]} : vector<8x16x72xf32> to vector<8x16x8xf32>
    %37 = vector.extract_strided_slice %36 {offsets = [0, 1, 0], sizes = [8, 15, 8], strides = [1, 1, 1]} : vector<8x16x8xf32> to vector<8x15x8xf32>
    %cst_28 = arith.constant 0.000000e+00 : f32
    %38 = vector.broadcast %cst_28 : f32 to vector<8x1x8xf32>
    %39 = tpu.concatenate %37, %38 in 1 : vector<8x15x8xf32>, vector<8x1x8xf32> -> vector<8x16x8xf32>
    %40 = arith.addf %35, %39 : vector<8x16x8xf32>
    %41 = vector.shape_cast %27 : vector<1x8xf32> to vector<1x1x8xf32>
    %42 = vector.broadcast %41 : vector<1x1x8xf32> to vector<8x16x8xf32>
    %43 = arith.addf %40, %42 : vector<8x16x8xf32>
    %c0_29 = arith.constant 0 : index
    %c0_30 = arith.constant 0 : index
    %c0_31 = arith.constant 0 : index
    %c0_32 = arith.constant 0 : index
    %c8 = arith.constant 8 : index
    %44 = vector.load %arg8[%c0_29, %c0_30, %c0_31, %c0_32, %c8] : memref<1x8x2x16x16xf32, #tpu.memory_space<vmem>>, vector<1x8x1x16x8xf32>
    %45 = vector.shape_cast %44 : vector<1x8x1x16x8xf32> to vector<8x16x8xf32>
    %46 = vector.shape_cast %43 : vector<8x16x8xf32> to vector<1x8x1x16x8xf32>
    tpu.vector_store %arg8[%c0_29, %c0_30, %c0_31, %c0_32, %c8], %46 {strides = array<i32>} : memref<1x8x2x16x16xf32, #tpu.memory_space<vmem>>, vector<1x8x1x16x8xf32>,
    %47 = vector.extract_strided_slice %11 {offsets = [0, 0, 16], sizes = [8, 16, 8], strides = [1, 1, 1]} : vector<8x16x72xf32> to vector<8x16x8xf32>
    %48 = vector.extract_strided_slice %11 {offsets = [0, 0, 48], sizes = [8, 16, 8], strides = [1, 1, 1]} : vector<8x16x72xf32> to vector<8x16x8xf32>
    %49 = vector.extract_strided_slice %26 {offsets = [0, 0], sizes = [16, 8], strides = [1, 1]} : vector<16x24xf32> to vector<16x8xf32>
    %50 = vector.extract_strided_slice %48 {offsets = [1, 0, 0], sizes = [7, 16, 8], strides = [1, 1, 1]} : vector<8x16x8xf32> to vector<7x16x8xf32>
    %51 = vector.shape_cast %49 : vector<16x8xf32> to vector<1x16x8xf32>
    %52 = tpu.concatenate %50, %51 in 0 : vector<7x16x8xf32>, vector<1x16x8xf32> -> vector<8x16x8xf32>
    %53 = arith.addf %47, %52 : vector<8x16x8xf32>
    %54 = vector.shape_cast %27 : vector<1x8xf32> to vector<1x1x8xf32>
    %55 = vector.broadcast %54 : vector<1x1x8xf32> to vector<8x16x8xf32>
    %56 = arith.addf %53, %55 : vector<8x16x8xf32>
    %c0_33 = arith.constant 0 : index
    %c0_34 = arith.constant 0 : index
    %c1 = arith.constant 1 : index
    %c0_35 = arith.constant 0 : index
    %c0_36 = arith.constant 0 : index
    %57 = vector.load %arg8[%c0_33, %c0_34, %c1, %c0_35, %c0_36] : memref<1x8x2x16x16xf32, #tpu.memory_space<vmem>>, vector<1x8x1x16x8xf32>
    %58 = vector.shape_cast %57 : vector<1x8x1x16x8xf32> to vector<8x16x8xf32>
    %59 = vector.shape_cast %56 : vector<8x16x8xf32> to vector<1x8x1x16x8xf32>
    tpu.vector_store %arg8[%c0_33, %c0_34, %c1, %c0_35, %c0_36], %59 {strides = array<i32>} : memref<1x8x2x16x16xf32, #tpu.memory_space<vmem>>, vector<1x8x1x16x8xf32>,
    %60 = vector.extract_strided_slice %11 {offsets = [0, 0, 24], sizes = [8, 16, 8], strides = [1, 1, 1]} : vector<8x16x72xf32> to vector<8x16x8xf32>
    %61 = vector.extract_strided_slice %11 {offsets = [0, 0, 40], sizes = [8, 16, 8], strides = [1, 1, 1]} : vector<8x16x72xf32> to vector<8x16x8xf32>
    %62 = vector.extract_strided_slice %61 {offsets = [0, 1, 0], sizes = [8, 15, 8], strides = [1, 1, 1]} : vector<8x16x8xf32> to vector<8x15x8xf32>
    %cst_37 = arith.constant 0.000000e+00 : f32
    %63 = vector.broadcast %cst_37 : f32 to vector<8x1x8xf32>
    %64 = tpu.concatenate %62, %63 in 1 : vector<8x15x8xf32>, vector<8x1x8xf32> -> vector<8x16x8xf32>
    %65 = arith.addf %60, %64 : vector<8x16x8xf32>
    %66 = vector.extract_strided_slice %11 {offsets = [0, 0, 56], sizes = [8, 16, 8], strides = [1, 1, 1]} : vector<8x16x72xf32> to vector<8x16x8xf32>
    %67 = vector.extract_strided_slice %26 {offsets = [0, 8], sizes = [16, 8], strides = [1, 1]} : vector<16x24xf32> to vector<16x8xf32>
    %68 = vector.extract_strided_slice %66 {offsets = [1, 0, 0], sizes = [7, 16, 8], strides = [1, 1, 1]} : vector<8x16x8xf32> to vector<7x16x8xf32>
    %69 = vector.shape_cast %67 : vector<16x8xf32> to vector<1x16x8xf32>
    %70 = tpu.concatenate %68, %69 in 0 : vector<7x16x8xf32>, vector<1x16x8xf32> -> vector<8x16x8xf32>
    %71 = arith.addf %65, %70 : vector<8x16x8xf32>
    %72 = vector.extract_strided_slice %11 {offsets = [0, 0, 64], sizes = [8, 16, 8], strides = [1, 1, 1]} : vector<8x16x72xf32> to vector<8x16x8xf32>
    %73 = vector.extract_strided_slice %26 {offsets = [0, 16], sizes = [16, 8], strides = [1, 1]} : vector<16x24xf32> to vector<16x8xf32>
    %74 = vector.extract_strided_slice %72 {offsets = [1, 0, 0], sizes = [7, 16, 8], strides = [1, 1, 1]} : vector<8x16x8xf32> to vector<7x16x8xf32>
    %75 = vector.shape_cast %73 : vector<16x8xf32> to vector<1x16x8xf32>
    %76 = tpu.concatenate %74, %75 in 0 : vector<7x16x8xf32>, vector<1x16x8xf32> -> vector<8x16x8xf32>
    %77 = vector.extract_strided_slice %76 {offsets = [0, 1, 0], sizes = [8, 15, 8], strides = [1, 1, 1]} : vector<8x16x8xf32> to vector<8x15x8xf32>
    %cst_38 = arith.constant 0.000000e+00 : f32
    %78 = vector.broadcast %cst_38 : f32 to vector<8x1x8xf32>
    %79 = tpu.concatenate %77, %78 in 1 : vector<8x15x8xf32>, vector<8x1x8xf32> -> vector<8x16x8xf32>
    %80 = arith.addf %71, %79 : vector<8x16x8xf32>
    %81 = vector.shape_cast %27 : vector<1x8xf32> to vector<1x1x8xf32>
    %82 = vector.broadcast %81 : vector<1x1x8xf32> to vector<8x16x8xf32>
    %83 = arith.addf %80, %82 : vector<8x16x8xf32>
    %c0_39 = arith.constant 0 : index
    %c0_40 = arith.constant 0 : index
    %c1_41 = arith.constant 1 : index
    %c0_42 = arith.constant 0 : index
    %c8_43 = arith.constant 8 : index
    %84 = vector.load %arg8[%c0_39, %c0_40, %c1_41, %c0_42, %c8_43] : memref<1x8x2x16x16xf32, #tpu.memory_space<vmem>>, vector<1x8x1x16x8xf32>
    %85 = vector.shape_cast %84 : vector<1x8x1x16x8xf32> to vector<8x16x8xf32>
    %86 = vector.shape_cast %83 : vector<8x16x8xf32> to vector<1x8x1x16x8xf32>
    tpu.vector_store %arg8[%c0_39, %c0_40, %c1_41, %c0_42, %c8_43], %86 {strides = array<i32>} : memref<1x8x2x16x16xf32, #tpu.memory_space<vmem>>, vector<1x8x1x16x8xf32>,
    return
  }
  func.func @transform_0(%arg0: i32, %arg1: i32) -> (i32, i32, i32, i32) {
    %c0_i32 = arith.constant 0 : i32
    %c0_i32_0 = arith.constant 0 : i32
    %c0_i32_1 = arith.constant 0 : i32
    return %arg0, %arg1, %c0_i32, %c0_i32_0 : i32, i32, i32, i32
  }
  func.func @transform_1(%arg0: i32, %arg1: i32) -> (i32, i32, i32, i32) {
    %c1_i32 = arith.constant 1 : i32
    %0 = arith.addi %arg1, %c1_i32 : i32
    %c8_i32 = arith.constant 8 : i32
    %1 = arith.muli %0, %c8_i32 : i32
    %c15_i32 = arith.constant 15 : i32
    %2 = arith.minsi %1, %c15_i32 : i32
    %c0_i32 = arith.constant 0 : i32
    %c0_i32_0 = arith.constant 0 : i32
    %c0_i32_1 = arith.constant 0 : i32
    return %arg0, %2, %c0_i32, %c0_i32_0 : i32, i32, i32, i32
  }
  func.func @transform_2(%arg0: i32, %arg1: i32) -> (i32, i32) {
    %c0_i32 = arith.constant 0 : i32
    %c0_i32_0 = arith.constant 0 : i32
    %c0_i32_1 = arith.constant 0 : i32
    return %c0_i32, %c0_i32_0 : i32, i32
  }
  func.func @transform_3(%arg0: i32, %arg1: i32) -> (i32, i32) {
    %c0_i32 = arith.constant 0 : i32
    %c0_i32_0 = arith.constant 0 : i32
    %c0_i32_1 = arith.constant 0 : i32
    return %c0_i32, %c0_i32_0 : i32, i32
  }
  func.func @transform_4(%arg0: i32, %arg1: i32) -> (i32, i32) {
    %c0_i32 = arith.constant 0 : i32
    %c0_i32_0 = arith.constant 0 : i32
    %c0_i32_1 = arith.constant 0 : i32
    return %c0_i32, %c0_i32_0 : i32, i32
  }
  func.func @transform_5(%arg0: i32, %arg1: i32) -> (i32, i32) {
    %c0_i32 = arith.constant 0 : i32
    %c0_i32_0 = arith.constant 0 : i32
    %c0_i32_1 = arith.constant 0 : i32
    return %c0_i32, %c0_i32_0 : i32, i32
  }
  func.func @transform_6(%arg0: i32, %arg1: i32) -> (i32, i32, i32, i32, i32) {
    %c0_i32 = arith.constant 0 : i32
    %c0_i32_0 = arith.constant 0 : i32
    %c0_i32_1 = arith.constant 0 : i32
    %c0_i32_2 = arith.constant 0 : i32
    return %arg0, %arg1, %c0_i32, %c0_i32_0, %c0_i32_1 : i32, i32, i32, i32, i32
  }
}

</mosaic_0001>

<bundles_post_ra>
// kernel: upsample_forward.1
= control target key start
LH: loop header
LB: loop body
LE: loop exit
PB: predicated region body
PF: predicated region fallthrough
CT: control target
= control target key end

     0   :  { %s1652_s21 = smov 0   ;;  %s1654_s22 = smov 0   ;;  %s2274_s0 = inlined_call_operand.vmem [shape: bf16[2,16,16,16], index: 0, kind: input, shape index: {}, may-alias: {0,1}]   ;;  %s2275_s1 = inlined_call_operand.vmem [shape: bf16[2,16,16,16], index: 1, kind: input, shape index: {}, may-alias: {0,1}]   ;;  %s2276_s2 = inlined_call_operand.vmem [shape: bf16[16,4], index: 2, kind: input, shape index: {}]   ;;  %s2277_s3 = inlined_call_operand.vmem [shape: bf16[4,72], index: 3, kind: input, shape index: {}]   ;;  %s2278_s4 = inlined_call_operand.vmem [shape: f32[1,4], index: 4, kind: input, shape index: {}]   ;;  %s2279_s5 = inlined_call_operand.vmem [shape: f32[1,8], index: 5, kind: input, shape index: {}]   ;;  %s2280_s6 = inlined_call_operand.vmem [shape: f32[2,16,2,16,16], index: 6, kind: output, shape index: {}]  }
   0x1   :  { %s1656_s23 = smov 0   ;;  %s1658_s24 = smov 0  }
   0x2   :  { %s1660_s25 = smov 0  }
   0x3 LB: > { %s25_s26 = sadd.s32 1, %s1598_s23  ;;  %s28_s27 = sadd.s32 1, %s1602_s24  ;;  %s1606_s25 = sphi %s1660_s25, %s16_s25   ;;  %s1602_s24 = sphi %s1658_s24, %s2284_s24   ;;  %s1598_s23 = sphi %s1656_s23, %s2283_s23   ;;  %s1594_s22 = sphi %s1654_s22, %s2282_s22   ;;  %s1590_s21 = sphi %s1652_s21, %s2281_s21  }
   0x4   : > { %p26_p0 = scmp.ge.s32.totalorder %s25_s26, 2  ;;  %p1391_p1 = scmp.ge.s32.totalorder %s1606_s25, 1 }
   0x5   : > { %p266_p2 = scmp.lt.s32.totalorder %s1606_s25, 5 }
   0x6   : > { %s2286_s26 = smov (%p26_p0, %s25_s26), 0  ;;  %s2288_s27 = smov (!%p26_p0, %s28_s27), %s1602_s24 }
   0x7   : > { %p267_p3 = pnand %p1391_p1, %p266_p2  ;;  %p30_p4 = scmp.ge.s32.totalorder %s2288_s27, 2 }
   0x8   : > { %s1392_s30 = sshll.u32 (!%p267_p3), %s1590_s21, 3  ;;  %p320_p5 = scmp.lt.s32.totalorder (!%p267_p3), %s1594_s22, 1 }
   0x9   : > { %s2290_s27 = smov (%p30_p4, %s2288_s27), 0  ;;  %270 = sbr.rel (%p267_p3) target bundleno = 792 (0x318), region = 44 }
   0xa   : > { %p322_p6 = scmp.lt.s32.totalorder (!%p267_p3), %s1392_s30, 15  ;;  %s1504_s18 = sadd.s32 (!%p267_p3), 8, %s1392_s30 }
   0xb   : > { %p332_p7 = scmp.lt.s32.totalorder (!%p267_p3), %s1504_s18, 15  ;;  %s1609_s15 = smov (!%p267_p3), 16  }
   0xc   : > { %s1610_s16 = smov (!%p267_p3), 24   ;;  %p588_p8 = scmp.lt.s32.totalorder (!%p267_p3), %s1590_s21, 1 }
   0xe   : > { %v1513_v0 = vld [vmem:[%s2276_s2] sm:$0xff]  ;;  %s2292_s22 = smov (!%p320_p5, %s1594_s22), 1  ;;  %vm427_vm0 = vcmask 130048   ;;  %s2294_s18 = smov (!%p332_p7, %s1504_s18), 15  ;;  %vm535_vm1 = vcmask 1041408   ;;  %vm510_vm2 = vcmask 31744  }
   0xf   : > { %459 = vmatpush.bf16.msra.mxu0 %v1513_v0  ;;  %1515 = vmatpush.bf16.msra.mxu2 %v1513_v0  ;;  %s323_s7 = scalar_select %p322_p6, %s1392_s30, 15  ;;  %v509_v7 = vld [vmem:[%s2277_s3] sm:$0x3]  ;;  %vm664_vm3 = vcmask 64512   ;;  %vm697_vm4 = vcmask 1046528   ;;  %vm829_vm5 = vcmask 130112  }
  0x10   : > { %s1394_s8 = sshll.u32 %s2292_s22, 5  ;;  %s1405_s9 = sshll.u32 %s2292_s22, 6  ;;  %616 = vst [vmem:[#allocation1] ss:$4 sm:$0xff] %v509_v7  ;;  %v537_v12 = vsel %vm535_vm1, %v509_v7, 0 }
  0x11   : > { %s1393_s10 = sshll.u32 %s323_s7, 1  ;;  %s1404_s11 = sshll.u32 %s323_s7, 2  ;;  %546 = vmatpush.bf16.msra.mxu1 %v537_v12  ;;  %1516 = vmatpush.bf16.msra.mxu3 %v537_v12  ;;  %v1566_v14 = vld [vmem:[%s2278_s4] ss:$0 sm:$0xff] }
  0x12   : > { %s326_s12 = sadd.s32 %s1394_s8, %s1393_s10  ;;  %s1692_s13 = sadd.s32 %s1405_s9, %s1404_s11  ;;  %v1735_v43 = vld [vmem:[%s2279_s5] ss:$0 sm:$0xff] }
  0x13   : > { %608 = vmatpush.bf16.msrb.mxu2 %v1513_v0  ;;  %s1395_s14 = sshll.u32 %s326_s12, 2  ;;  %s2296_s18 = smov (!%p332_p7, %s2294_s18), 15  ;;  %1166 = vrot.lane.b32.xlu1 %v1735_v43, %s1610_s16 }
  0x14   : > { %s1697_s17 = scalar_lea.vmem %s2274_s0, %s1395_s14  ;;  %s1400_s22 = sshll.u32 %s2296_s18, 1 }
  0x15   : > { %v1505_v1 = vld [vmem:[%s1697_s17] sm:$0xff]  ;;  %v1510_v2 = vld [vmem:[%s1697_s17 + $0x28] sm:$0xff]  ;;  %v1511_v4 = vld [vmem:[%s1697_s17 + $0x30] sm:$0xff]  ;;  %s340_s28 = sadd.s32 %s1400_s22, %s1394_s8  ;;  %s1608_s30 = smov 80  }
  0x16   : > { %1443 = vmatmul.msk.bf16.vlgmr.msra.gmra.mxu0 %vm427_vm0, %v1505_v1  ;;  %1448 = vmatmul.msk.bf16.vlgmr.msra.gmra.mxu2 %vm427_vm0, %v1510_v2  ;;  %v1506_v3 = vld [vmem:[%s1697_s17 + $0x8] sm:$0xff]  ;;  %v1507_v5 = vld [vmem:[%s1697_s17 + $0x10] sm:$0xff]  ;;  %v1512_v6 = vld [vmem:[%s1697_s17 + $0x38] sm:$0xff]  ;;  %s1402_s29 = sshll.u32 %s340_s28, 2  ;;  %s1406_s18 = sshll.u32 %s1692_s13, 3 }
  0x17   : > { %v617_v8 = vld.sshfl [vmem:[#allocation1] sm:$0xff pattern:$0x73625140]  ;;  %s342_s10 = scalar_lea.vmem %s2275_s1, %s1402_s29  ;;  %v1508_v9 = vld [vmem:[%s1697_s17 + $0x18] sm:$0xff]  ;;  %s1748_s22 = scalar_lea.vmem %s2280_s6, %s1406_s18 }
  0x18   : > { %619 = vrot.lane.b32.xlu0 %v617_v8, %s1608_s30  ;;  %v1514_v10 = vld [vmem:[%s342_s10] sm:$0xff]  ;;  %s1612_s13 = smov 104   ;;  %s1613_s28 = smov 112  }
  0x19   : > { %v1509_v11 = vld [vmem:[%s1697_s17 + $0x20] sm:$0xff]  ;;  %s1611_s17 = smov 8   ;;  %s1614_s29 = smov 96  }
  0x1a   : > { %810 = vrot.lane.b32.xlu2 %v1735_v43, %s1611_s17  ;;  %s1615_s30 = smov 88   ;;  %s1616_s9 = smov 48  }
  0x1b   : > { %s589_s21 = scalar_select %p588_p8, 1, 0 }
  0x1d   : > { %s590_s7 = scvt.s32.f32 %s589_s21 }
  0x20   : > { %916 = vrot.lane.b32.xlu0 %v1735_v43, %s1609_s15 }
  0x26   : > { %1444 = vmatmul.msk.bf16.gmra.mxu0 %vm427_vm0, %v1506_v3  ;;  %1449 = vmatmul.msk.bf16.gmra.mxu2 %vm427_vm0, %v1511_v4 }
  0x36   : > { %1445 = vmatmul.msk.bf16.gmra.mxu0 %vm427_vm0, %v1507_v5  ;;  %1450 = vmatmul.msk.bf16.gmra.mxu2 %vm427_vm0, %v1512_v6 }
  0x46   : > { %1446 = vmatmul.msk.bf16.gmra.mxu0 %vm427_vm0, %v1508_v9  ;;  %1463 = vmatmul.msk.bf16.vlgmr.msrb.gmra.mxu2 %vm427_vm0, %v1514_v10 }
  0x56   : > { %1447 = vmatmul.msk.bf16.gmra.mxu0 %vm427_vm0, %v1509_v11 }
  0x8a   : > { %v620_v32 = vpop.permute.xlu0 %619 }
  0x8b   : > { %v625_v34 = vsel %vm535_vm1, %v620_v32, 0 }
  0x8c   : > { %634 = vmatpush.bf16.msrb.mxu3 %v625_v34 }
  0x93   : > { %v461_v13 = vpop.f32.mrf.mxu0 }
  0x94   : > { %v462_v17 = vadd.f32 %v1566_v14, %v461_v13 }
  0x99   : > { %v486_v15 = vpop.f32.mrf.mxu2 }
  0x9a   : > { %v487_v21 = vadd.f32 %v1566_v14, %v486_v15 }
  0x9b   : > { %v463_v16 = vpop.f32.mrf.mxu0 }
  0x9c   : > { %v464_v18 = vadd.f32 %v1566_v14, %v463_v16 }
  0x9e   : > { %v501_v19 = vpack.c.bf16 %v464_v18, %v462_v17 }
  0xa0   : > { %1451 = vmatmul.msk.bf16.vlgmr.msra.gmra.mxu1 %vm510_vm2, %v501_v19 }
  0xa1   : > { %v488_v20 = vpop.f32.mrf.mxu2 }
  0xa2   : > { %v489_v22 = vadd.f32 %v1566_v14, %v488_v20 }
  0xa3   : > { %v466_v23 = vpop.f32.mrf.mxu0 }
  0xa4   : > { %v506_v24 = vpack.c.bf16 %v489_v22, %v487_v21  ;;  %v467_v26 = vadd.f32 %v1566_v14, %v466_v23 }
  0xa6   : > { %1456 = vmatmul.msk.bf16.vlgmr.msra.gmra.mxu3 %vm510_vm2, %v506_v24 }
  0xa9   : > { %v491_v25 = vpop.f32.mrf.mxu2 }
  0xaa   : > { %v492_v30 = vadd.f32 %v1566_v14, %v491_v25 }
  0xab   : > { %v468_v27 = vpop.f32.mrf.mxu0 }
  0xac   : > { %v469_v28 = vadd.f32 %v1566_v14, %v468_v27 }
  0xae   : > { %v502_v29 = vpack.c.bf16 %v469_v28, %v467_v26 }
  0xb0   : > { %1452 = vmatmul.msk.bf16.gmra.mxu1 %vm510_vm2, %v502_v29 }
  0xb1   : > { %v493_v31 = vpop.f32.mrf.mxu2 }
  0xb2   : > { %v494_v33 = vadd.f32 %v1566_v14, %v493_v31 }
  0xb3   : > { %v471_v35 = vpop.f32.mrf.mxu0 }
  0xb4   : > { %v507_v36 = vpack.c.bf16 %v494_v33, %v492_v30  ;;  %v472_v38 = vadd.f32 %v1566_v14, %v471_v35 }
  0xb6   : > { %1457 = vmatmul.msk.bf16.gmra.mxu3 %vm510_vm2, %v507_v36 }
  0xb9   : > { %v496_v37 = vpop.f32.mrf.mxu2 }
  0xba   : > { %v497_v42 = vadd.f32 %v1566_v14, %v496_v37 }
  0xbb   : > { %v473_v39 = vpop.f32.mrf.mxu0 }
  0xbc   : > { %v474_v40 = vadd.f32 %v1566_v14, %v473_v39 }
  0xbe   : > { %v503_v41 = vpack.c.bf16 %v474_v40, %v472_v38 }
  0xc0   : > { %1453 = vmatmul.msk.bf16.gmra.mxu1 %vm510_vm2, %v503_v41 }
  0xc1   : > { %v498_v44 = vpop.f32.mrf.mxu2 }
  0xc2   : > { %v499_v45 = vadd.f32 %v1566_v14, %v498_v44 }
  0xc3   : > { %v476_v46 = vpop.f32.mrf.mxu0 }
  0xc4   : > { %v508_v47 = vpack.c.bf16 %v499_v45, %v497_v42  ;;  %v477_v49 = vadd.f32 %v1566_v14, %v476_v46 }
  0xc6   : > { %1458 = vmatmul.msk.bf16.gmra.mxu3 %vm510_vm2, %v508_v47 }
  0xc9   : > { %v610_v48 = vpop.f32.mrf.mxu2 }
  0xca   : > { %v611_v53 = vadd.f32 %v1566_v14, %v610_v48 }
  0xcb   : > { %v478_v50 = vpop.f32.mrf.mxu0 }
  0xcc   : > { %v479_v51 = vadd.f32 %v1566_v14, %v478_v50 }
  0xce   : > { %v504_v52 = vpack.c.bf16 %v479_v51, %v477_v49  ;;  %v1906_v51 = vpop.permute.xlu2 %810 }
  0xd0   : > { %1454 = vmatmul.msk.bf16.gmra.mxu1 %vm510_vm2, %v504_v52 }
  0xd1   : > { %v612_v54 = vpop.f32.mrf.mxu2 }
  0xd2   : > { %v613_v55 = vadd.f32 %v1566_v14, %v612_v54 }
  0xd3   : > { %v481_v56 = vpop.f32.mrf.mxu0 }
  0xd4   : > { %v615_v57 = vpack.c.bf16 %v613_v55, %v611_v53  ;;  %v482_v58 = vadd.f32 %v1566_v14, %v481_v56 }
  0xd6   : > { %1464 = vmatmul.msk.bf16.vlgmr.msrb.gmra.mxu3 %vm510_vm2, %v615_v57  ;;  %v1927_v57 = vpop.permute.xlu1 %1166 }
  0xdb   : > { %v483_v59 = vpop.f32.mrf.mxu0 }
  0xdc   : > { %v484_v60 = vadd.f32 %v1566_v14, %v483_v59  ;;  %v1933_v59 = vpop.permute.xlu0 %916 }
  0xde   : > { %v505_v61 = vpack.c.bf16 %v484_v60, %v482_v58 }
  0xe0   : > { %1455 = vmatmul.msk.bf16.gmra.mxu1 %vm510_vm2, %v505_v61 }
 0x11d   : > { %v1750_v62 = vpop.f32.mrf.mxu1 }
 0x11e   : > { %v648_v63 = vadd.f32 %v1735_v43, %v1750_v62  ;;  %v698_v3 = vrot.slane %v1750_v62, 1 }
 0x120   : > { %665 = vst.msk [vmem:[%s1748_s22] sm:$0xff] %vm664_vm3, %v648_v63 }
 0x125   : > { %v1756_v0 = vpop.f32.mrf.mxu1 }
 0x126   : > { %v649_v1 = vadd.f32 %v1735_v43, %v1756_v0  ;;  %v699_v2 = vrot.slane %v1756_v0, 1 }
 0x128   : > { %666 = vst.msk [vmem:[%s1748_s22 + $0x8] sm:$0xff] %vm664_vm3, %v649_v1  ;;  %v730_v4 = vsel %vm697_vm4, %v699_v2, 0.0  ;;  %v700_v5 = vsel %vm697_vm4, %v698_v3, %v699_v2 }
 0x129   : > { %v1766_v6 = vpop.f32.mrf.mxu3  ;;  %748 = vrot.lane.b32.xlu1 %v730_v4, %s1612_s13  ;;  %1016 = vrot.lane.b32.xlu2 %v700_v5, %s1613_s28 }
 0x12a   : > { %v658_v7 = vadd.f32 %v1735_v43, %v1766_v6  ;;  %746 = vrot.lane.b32.xlu0 %v700_v5, %s1612_s13  ;;  %v713_v21 = vrot.slane %v1766_v6, 1 }
 0x12c   : > { %675 = vst.msk [vmem:[%s1748_s22 + $0xa0] sm:$0xff] %vm664_vm3, %v658_v7 }
 0x12d   : > { %v1775_v8 = vpop.f32.mrf.mxu1 }
 0x12e   : > { %v650_v9 = vadd.f32 %v1735_v43, %v1775_v8  ;;  %v701_v17 = vrot.slane %v1775_v8, 1 }
 0x130   : > { %667 = vst.msk [vmem:[%s1748_s22 + $0x20] sm:$0xff] %vm664_vm3, %v650_v9 }
 0x131   : > { %v1781_v10 = vpop.f32.mrf.mxu3  ;;  %868 = vrot.lane.b32.xlu1 %v1766_v6, %s1614_s29  ;;  %852 = vrot.lane.b32.xlu2 %v1775_v8, %s1614_s29 }
 0x132   : > { %v659_v11 = vadd.f32 %v1735_v43, %v1781_v10  ;;  %1018 = vrot.lane.b32.xlu0 %v730_v4, %s1613_s28  ;;  %v714_v12 = vrot.slane %v1781_v10, 1 }
 0x134   : > { %676 = vst.msk [vmem:[%s1748_s22 + $0xa8] sm:$0xff] %vm664_vm3, %v659_v11  ;;  %v735_v15 = vsel %vm697_vm4, %v714_v12, 0.0  ;;  %v715_v24 = vsel %vm697_vm4, %v713_v21, %v714_v12 }
 0x135   : > { %v1793_v13 = vpop.f32.mrf.mxu1 }
 0x136   : > { %v651_v14 = vadd.f32 %v1735_v43, %v1793_v13  ;;  %v702_v18 = vrot.slane %v1793_v13, 1 }
 0x138   : > { %668 = vst.msk [vmem:[%s1748_s22 + $0x28] sm:$0xff] %vm664_vm3, %v651_v14  ;;  %v703_v22 = vsel %vm697_vm4, %v701_v17, %v702_v18  ;;  %v731_v29 = vsel %vm697_vm4, %v702_v18, 0.0 }
 0x139   : > { %1038 = vrot.lane.b32.xlu1 %v735_v15, %s1613_s28  ;;  %870 = vrot.lane.b32.xlu2 %v1781_v10, %s1614_s29  ;;  %v1803_v16 = vpop.f32.mrf.mxu3 }
 0x13a   : > { %768 = vrot.lane.b32.xlu0 %v735_v15, %s1612_s13  ;;  %v660_v19 = vadd.f32 %v1735_v43, %v1803_v16  ;;  %v716_v40 = vrot.slane %v1803_v16, 1 }
 0x13c   : > { %677 = vst.msk [vmem:[%s1748_s22 + $0xc0] sm:$0xff] %vm664_vm3, %v660_v19 }
 0x13d   : > { %v1812_v20 = vpop.f32.mrf.mxu1 }
 0x13e   : > { %v652_v23 = vadd.f32 %v1735_v43, %v1812_v20  ;;  %v704_v48 = vrot.slane %v1812_v20, 1 }
 0x140   : > { %669 = vst.msk [vmem:[%s1748_s22 + $0x40] sm:$0xff] %vm664_vm3, %v652_v23  ;;  %v641_v23 = vstv %s590_s7 }
 0x141   : > { %766 = vrot.lane.b32.xlu2 %v715_v24, %s1612_s13  ;;  %750 = vrot.lane.b32.xlu1 %v703_v22, %s1612_s13  ;;  %v1823_v25 = vpop.f32.mrf.mxu3 }
 0x142   : > { %1036 = vrot.lane.b32.xlu0 %v715_v24, %s1613_s28  ;;  %v661_v26 = vadd.f32 %v1735_v43, %v1823_v25  ;;  %v717_v37 = vrot.slane %v1823_v25, 1 }
 0x144   : > { %678 = vst.msk [vmem:[%s1748_s22 + $0xc8] sm:$0xff] %vm664_vm3, %v661_v26  ;;  %v736_v39 = vsel %vm697_vm4, %v717_v37, 0.0  ;;  %v718_v41 = vsel %vm697_vm4, %v716_v40, %v717_v37 }
 0x145   : > { %v1830_v27 = vpop.f32.mrf.mxu1 }
 0x146   : > { %v653_v28 = vadd.f32 %v1735_v43, %v1830_v27  ;;  %v705_v44 = vrot.slane %v1830_v27, 1 }
 0x148   : > { %670 = vst.msk [vmem:[%s1748_s22 + $0x48] sm:$0xff] %vm664_vm3, %v653_v28  ;;  %v732_v46 = vsel %vm697_vm4, %v705_v44, 0.0  ;;  %v706_v50 = vsel %vm697_vm4, %v704_v48, %v705_v44 }
 0x149   : > { %1118 = vrot.lane.b32.xlu2 %v715_v24, %s1615_s30  ;;  %1020 = vrot.lane.b32.xlu1 %v703_v22, %s1613_s28  ;;  %v1844_v30 = vpop.f32.mrf.mxu3 }
 0x14a   : > { %1120 = vrot.lane.b32.xlu0 %v735_v15, %s1615_s30  ;;  %v662_v32 = vadd.f32 %v1735_v43, %v1844_v30  ;;  %v719_v54 = vrot.slane %v1844_v30, 1 }
 0x14c   : > { %679 = vst.msk [vmem:[%s1748_s22 + $0xe0] sm:$0xff] %vm664_vm3, %v662_v32 }
 0x14d   : > { %v1846_v31 = vpop.f32.mrf.mxu1 }
 0x14e   : > { %v654_v33 = vadd.f32 %v1735_v43, %v1846_v31  ;;  %v707_v4 = vrot.slane %v1846_v31, 1 }
 0x150   : > { %671 = vst.msk [vmem:[%s1748_s22 + $0x60] sm:$0xff] %vm664_vm3, %v654_v33 }
 0x151   : > { %752 = vrot.lane.b32.xlu2 %v731_v29, %s1612_s13  ;;  %1104 = vrot.lane.b32.xlu1 %v731_v29, %s1615_s30  ;;  %v1860_v34 = vpop.f32.mrf.mxu3 }
 0x152   : > { %854 = vrot.lane.b32.xlu0 %v1793_v13, %s1614_s29  ;;  %v663_v35 = vadd.f32 %v1735_v43, %v1860_v34  ;;  %v720_v52 = vrot.slane %v1860_v34, 1 }
 0x154   : > { %680 = vst.msk [vmem:[%s1748_s22 + $0xe8] sm:$0xff] %vm664_vm3, %v663_v35  ;;  %v737_v53 = vsel %vm697_vm4, %v720_v52, 0.0  ;;  %v721_v55 = vsel %vm697_vm4, %v719_v54, %v720_v52 }
 0x155   : > { %v1864_v36 = vpop.f32.mrf.mxu1 }
 0x156   : > { %v655_v38 = vadd.f32 %v1735_v43, %v1864_v36  ;;  %v708_v3 = vrot.slane %v1864_v36, 1 }
 0x158   : > { %672 = vst.msk [vmem:[%s1748_s22 + $0x68] sm:$0xff] %vm664_vm3, %v655_v38  ;;  %v733_v12 = vsel %vm697_vm4, %v708_v3, 0.0  ;;  %v709_v14 = vsel %vm697_vm4, %v707_v4, %v708_v3 }
 0x159   : > { %1022 = vrot.lane.b32.xlu2 %v731_v29, %s1613_s28  ;;  %856 = vrot.lane.b32.xlu1 %v1812_v20, %s1614_s29  ;;  %v636_v15 = vpop.f32.mrf.mxu3 }
 0x15a   : > { %1102 = vrot.lane.b32.xlu0 %v703_v22, %s1615_s30  ;;  %v642_v37 = vmul.f32 %v641_v23, %v636_v15 }
 0x15d   : > { %v1884_v42 = vpop.f32.mrf.mxu1 }
 0x15e   : > { %v656_v45 = vadd.f32 %v1735_v43, %v1884_v42  ;;  %v710_v48 = vrot.slane %v1884_v42, 1 }
 0x160   : > { %673 = vst.msk [vmem:[%s1748_s22 + $0x80] sm:$0xff] %vm664_vm3, %v656_v45 }
 0x161   : > { %772 = vrot.lane.b32.xlu2 %v736_v39, %s1612_s13  ;;  %874 = vrot.lane.b32.xlu1 %v1823_v25, %s1614_s29  ;;  %v638_v24 = vpop.f32.mrf.mxu3 }
 0x162   : > { %872 = vrot.lane.b32.xlu0 %v1803_v16, %s1614_s29  ;;  %v643_v33 = vmul.f32 %v641_v23, %v638_v24 }
 0x165   : > { %v1895_v47 = vpop.f32.mrf.mxu1 }
 0x166   : > { %v657_v49 = vadd.f32 %v1735_v43, %v1895_v47  ;;  %v711_v38 = vrot.slane %v1895_v47, 1 }
 0x168   : > { %674 = vst.msk [vmem:[%s1748_s22 + $0x88] sm:$0xff] %vm664_vm3, %v657_v49 }
 0x169   : > { %1040 = vrot.lane.b32.xlu2 %v718_v41, %s1613_s28  ;;  %770 = vrot.lane.b32.xlu1 %v718_v41, %s1612_s13 }
 0x16a   : > { %1042 = vrot.lane.b32.xlu0 %v736_v39, %s1613_s28 }
 0x171   : > { %1124 = vrot.lane.b32.xlu2 %v736_v39, %s1615_s30  ;;  %1122 = vrot.lane.b32.xlu1 %v718_v41, %s1615_s30 }
 0x172   : > { %756 = vrot.lane.b32.xlu0 %v732_v46, %s1612_s13 }
 0x179   : > { %858 = vrot.lane.b32.xlu2 %v1830_v27, %s1614_s29  ;;  %1026 = vrot.lane.b32.xlu1 %v732_v46, %s1613_s28 }
 0x17a   : > { %1024 = vrot.lane.b32.xlu0 %v706_v50, %s1613_s28 }
 0x181   : > { %776 = vrot.lane.b32.xlu1 %v737_v53, %s1612_s13  ;;  %754 = vrot.lane.b32.xlu2 %v706_v50, %s1612_s13 }
 0x182   : > { %1108 = vrot.lane.b32.xlu0 %v732_v46, %s1615_s30  ;;  %v734_v46 = vsel %vm697_vm4, %v711_v38, 0.0 }
 0x183   : > { %v1914_v43 = vpop.permute.xlu2 %1016 }
 0x189   : > { %1044 = vrot.lane.b32.xlu1 %v721_v55, %s1613_s28  ;;  %1106 = vrot.lane.b32.xlu2 %v706_v50, %s1615_s30 }
 0x18a   : > { %860 = vrot.lane.b32.xlu0 %v1846_v31, %s1614_s29 }
 0x18b   : > { %v1922_v56 = vpop.permute.xlu2 %852 }
 0x191   : > { %1128 = vrot.lane.b32.xlu1 %v737_v53, %s1615_s30  ;;  %876 = vrot.lane.b32.xlu2 %v1844_v30, %s1614_s29 }
 0x192   : > { %878 = vrot.lane.b32.xlu0 %v1860_v34, %s1614_s29 }
 0x193   : > { %v1931_v58 = vpop.permute.xlu2 %870 }
 0x199   : > { %1046 = vrot.lane.b32.xlu2 %v737_v53, %s1613_s28  ;;  %862 = vrot.lane.b32.xlu1 %v1864_v36, %s1614_s29 }
 0x19a   : > { %774 = vrot.lane.b32.xlu0 %v721_v55, %s1612_s13 }
 0x19b   : > { %v749_v60 = vpop.permute.xlu1 %748  ;;  %v767_v61 = vpop.permute.xlu2 %766 }
 0x19c   : > { %v795_v63 = vadd.f32 %v749_v60, %v1756_v0  ;;  %v747_v1 = vpop.permute.xlu0 %746  ;;  %v804_v2 = vadd.f32 %v767_v61, %v1766_v6 }
 0x19d   : > { %v794_v5 = vadd.f32 %v747_v1, %v1750_v62 }
 0x19e   : > { %v814_v7 = vadd.f32 %v1906_v51, %v795_v63  ;;  %v823_v9 = vadd.f32 %v1906_v51, %v804_v2 }
 0x19f   : > { %v813_v11 = vadd.f32 %v1906_v51, %v794_v5 }
 0x1a0   : > { %831 = vst.msk [vmem:[%s1748_s22 + $0x8] sm:$0xff] %vm829_vm5, %v814_v7  ;;  %v1064_v7 = vadd.f32 %v1914_v43, %v1750_v62 }
 0x1a1   : > { %830 = vst.msk [vmem:[%s1748_s22] sm:$0xff] %vm829_vm5, %v813_v11  ;;  %760 = vrot.lane.b32.xlu2 %v733_v12, %s1612_s13  ;;  %758 = vrot.lane.b32.xlu1 %v709_v14, %s1612_s13  ;;  %v900_v11 = vadd.f32 %v1922_v56, %v1750_v62 }
 0x1a2   : > { %840 = vst.msk [vmem:[%s1748_s22 + $0xa0] sm:$0xff] %vm829_vm5, %v823_v9  ;;  %1126 = vrot.lane.b32.xlu0 %v721_v55, %s1615_s30  ;;  %v712_v55 = vsel %vm697_vm4, %v710_v48, %v711_v38 }
 0x1a3   : > { %v1959_v17 = vpop.permute.xlu1 %868  ;;  %v1961_v18 = vpop.permute.xlu2 %1118  ;;  %v919_v24 = vadd.f32 %v1933_v59, %v900_v11 }
 0x1a4   : > { %v1019_v19 = vpop.permute.xlu0 %1018  ;;  %v908_v15 = vadd.f32 %v1959_v17, %v1884_v42 }
 0x1a5   : > { %v1065_v60 = vadd.f32 %v1019_v19, %v1756_v0 }
 0x1a9   : > { %1028 = vrot.lane.b32.xlu2 %v709_v14, %s1613_s28  ;;  %1110 = vrot.lane.b32.xlu1 %v709_v14, %s1615_s30 }
 0x1aa   : > { %1030 = vrot.lane.b32.xlu0 %v733_v12, %s1613_s28 }
 0x1ab   : > { %v1966_v21 = vpop.permute.xlu1 %1038  ;;  %v753_v22 = vpop.permute.xlu2 %752 }
 0x1ac   : > { %v769_v26 = vpop.permute.xlu0 %768  ;;  %v797_v28 = vadd.f32 %v753_v22, %v1793_v13  ;;  %v1075_v62 = vadd.f32 %v1966_v21, %v1781_v10 }
 0x1ad   : > { %v805_v29 = vadd.f32 %v769_v26, %v1781_v10  ;;  %v927_v26 = vadd.f32 %v1933_v59, %v908_v15 }
 0x1ae   : > { %v816_v32 = vadd.f32 %v1906_v51, %v797_v28 }
 0x1af   : > { %v824_v35 = vadd.f32 %v1906_v51, %v805_v29 }
 0x1b0   : > { %833 = vst.msk [vmem:[%s1748_s22 + $0x28] sm:$0xff] %vm829_vm5, %v816_v32 }
 0x1b1   : > { %841 = vst.msk [vmem:[%s1748_s22 + $0xa8] sm:$0xff] %vm829_vm5, %v824_v35  ;;  %1112 = vrot.lane.b32.xlu2 %v733_v12, %s1615_s30  ;;  %850 = vrot.lane.b32.xlu1 %v643_v33, %s1616_s9  ;;  %v909_v33 = vadd.f32 %v1931_v58, %v1895_v47 }
 0x1b2   : > { %848 = vrot.lane.b32.xlu0 %v642_v37, %s1616_s9 }
 0x1b3   : > { %v1023_v39 = vpop.permute.xlu2 %1022  ;;  %v751_v40 = vpop.permute.xlu1 %750 }
 0x1b4   : > { %v1037_v41 = vpop.permute.xlu0 %1036  ;;  %v796_v44 = vadd.f32 %v751_v40, %v1775_v8 }
 0x1b5   : > { %v1074_v28 = vadd.f32 %v1037_v41, %v1766_v6  ;;  %v928_v41 = vadd.f32 %v1933_v59, %v909_v33 }
 0x1b6   : > { %v815_v45 = vadd.f32 %v1906_v51, %v796_v44 }
 0x1b8   : > { %832 = vst.msk [vmem:[%s1748_s22 + $0x20] sm:$0xff] %vm829_vm5, %v815_v45 }
 0x1b9   : > { %864 = vrot.lane.b32.xlu2 %v1884_v42, %s1614_s29  ;;  %764 = vrot.lane.b32.xlu1 %v734_v46, %s1612_s13 }
 0x1ba   : > { %866 = vrot.lane.b32.xlu0 %v1895_v47, %s1614_s29 }
 0x1bb   : > { %v773_v49 = vpop.permute.xlu2 %772  ;;  %v1021_v50 = vpop.permute.xlu1 %1020 }
 0x1bc   : > { %v1989_v52 = vpop.permute.xlu0 %1120  ;;  %v807_v53 = vadd.f32 %v773_v49, %v1823_v25  ;;  %v1066_v9 = vadd.f32 %v1021_v50, %v1775_v8 }
 0x1be   : > { %v826_v54 = vadd.f32 %v1906_v51, %v807_v53 }
 0x1c0   : > { %843 = vst.msk [vmem:[%s1748_s22 + $0xc8] sm:$0xff] %vm829_vm5, %v826_v54 }
 0x1c1   : > { %1034 = vrot.lane.b32.xlu2 %v734_v46, %s1613_s28  ;;  %1032 = vrot.lane.b32.xlu1 %v712_v55, %s1613_s28 }
 0x1c2   : > { %762 = vrot.lane.b32.xlu0 %v712_v55, %s1612_s13 }
 0x1c3   : > { %v2000_v61 = vpop.permute.xlu2 %1040  ;;  %v1105_v63 = vpop.permute.xlu1 %1104 }
 0x1c4   : > { %v855_v1 = vpop.permute.xlu0 %854  ;;  %v1076_v11 = vadd.f32 %v2000_v61, %v1803_v16 }
 0x1c5   : > { %v901_v2 = vadd.f32 %v855_v1, %v1756_v0  ;;  %v1081_v3 = vadd.f32 %v1065_v60, %v855_v1  ;;  %v1080_v0 = vadd.f32 %v1064_v7, %v1922_v56  ;;  %v1067_v56 = vadd.f32 %v1023_v39, %v1793_v13 }
 0x1c7   : > { %v920_v4 = vadd.f32 %v1933_v59, %v901_v2  ;;  %v2004_v5 = vadd.f32 %v1105_v63, %v1081_v3 }
 0x1c9   : > { %953 = vrot.lane.b32.xlu2 %v920_v4, %s1613_s28  ;;  %1116 = vrot.lane.b32.xlu1 %v734_v46, %s1615_s30 }
 0x1ca   : > { %1114 = vrot.lane.b32.xlu0 %v712_v55, %s1615_s30 }
 0x1cb   : > { %v1125_v12 = vpop.permute.xlu2 %1124  ;;  %v857_v14 = vpop.permute.xlu1 %856 }
 0x1cc   : > { %v1103_v19 = vpop.permute.xlu0 %1102  ;;  %v1082_v43 = vadd.f32 %v1066_v9, %v857_v14  ;;  %v902_v35 = vadd.f32 %v857_v14, %v1775_v8 }
 0x1cd   : > { %v1150_v22 = vadd.f32 %v1103_v19, %v1080_v0 }
 0x1ce   : > { %v921_v46 = vadd.f32 %v1933_v59, %v902_v35 }
 0x1cf   : > { %v1169_v23 = vadd.f32 %v1927_v57, %v1150_v22 }
 0x1d1   : > { %1201 = vrot.lane.b32.xlu2 %v1169_v23, %s1613_s28  ;;  %951 = vrot.lane.b32.xlu1 %v919_v24, %s1613_s28 }
 0x1d2   : > { %967 = vrot.lane.b32.xlu0 %v927_v26, %s1613_s28 }
 0x1d3   : > { %v875_v29 = vpop.permute.xlu1 %874  ;;  %v859_v32 = vpop.permute.xlu2 %858 }
 0x1d4   : > { %v873_v37 = vpop.permute.xlu0 %872  ;;  %v1091_v38 = vadd.f32 %v1075_v62, %v875_v29  ;;  %v2030_v40 = vadd.f32 %v1067_v56, %v859_v32  ;;  %v903_v8 = vadd.f32 %v859_v32, %v1793_v13  ;;  %v911_v49 = vadd.f32 %v875_v29, %v1781_v10 }
 0x1d5   : > { %v910_v44 = vadd.f32 %v873_v37, %v1766_v6  ;;  %v1090_v21 = vadd.f32 %v1074_v28, %v873_v37 }
 0x1d6   : > { %v2033_v45 = vadd.f32 %v1125_v12, %v1091_v38  ;;  %v922_v63 = vadd.f32 %v1933_v59, %v903_v8  ;;  %v930_v1 = vadd.f32 %v1933_v59, %v911_v49 }
 0x1d7   : > { %v929_v39 = vadd.f32 %v1933_v59, %v910_v44 }
 0x1d9   : > { %971 = vrot.lane.b32.xlu2 %v929_v39, %s1613_s28  ;;  %969 = vrot.lane.b32.xlu1 %v928_v41, %s1613_s28 }
 0x1da   : > { %955 = vrot.lane.b32.xlu0 %v921_v46, %s1613_s28 }
 0x1db   : > { %v771_v6 = vpop.permute.xlu1 %770  ;;  %v755_v48 = vpop.permute.xlu2 %754 }
 0x1dc   : > { %v1043_v50 = vpop.permute.xlu0 %1042  ;;  %v806_v53 = vadd.f32 %v771_v6, %v1803_v16  ;;  %v798_v54 = vadd.f32 %v755_v48, %v1812_v20 }
 0x1dd   : > { %v1077_v35 = vadd.f32 %v1043_v50, %v1823_v25 }
 0x1de   : > { %v825_v55 = vadd.f32 %v1906_v51, %v806_v53  ;;  %v817_v60 = vadd.f32 %v1906_v51, %v798_v54 }
 0x1e0   : > { %842 = vst.msk [vmem:[%s1748_s22 + $0xc0] sm:$0xff] %vm829_vm5, %v825_v55 }
 0x1e1   : > { %834 = vst.msk [vmem:[%s1748_s22 + $0x40] sm:$0xff] %vm829_vm5, %v817_v60  ;;  %957 = vrot.lane.b32.xlu1 %v922_v63, %s1613_s28 }
 0x1e2   : > { %973 = vrot.lane.b32.xlu0 %v930_v1, %s1613_s28 }
 0x1e3   : > { %v1123_v10 = vpop.permute.xlu1 %1122  ;;  %v1107_v13 = vpop.permute.xlu2 %1106 }
 0x1e4   : > { %v2055_v2 = vadd.f32 %v1123_v10, %v1090_v21  ;;  %v757_v3 = vpop.permute.xlu0 %756  ;;  %v2057_v4 = vadd.f32 %v1107_v13, %v1082_v43 }
 0x1e5   : > { %v799_v7 = vadd.f32 %v757_v3, %v1830_v27 }
 0x1e7   : > { %v818_v9 = vadd.f32 %v1906_v51, %v799_v7 }
 0x1e9   : > { %835 = vst.msk [vmem:[%s1748_s22 + $0x48] sm:$0xff] %vm829_vm5, %v818_v9 }
 0x1eb   : > { %v2065_v0 = vpop.permute.xlu1 %1026  ;;  %v877_v12 = vpop.permute.xlu2 %876 }
 0x1ec   : > { %v2067_v14 = vpop.permute.xlu0 %1024  ;;  %v912_v15 = vadd.f32 %v877_v12, %v1803_v16  ;;  %v2070_v19 = vadd.f32 %v1076_v11, %v877_v12 }
 0x1ee   : > { %v931_v43 = vadd.f32 %v1933_v59, %v912_v15 }
 0x1f0   : > { %975 = vrot.lane.b32.xlu1 %v931_v43, %s1613_s28 }
 0x1f3   : > { %v777_v22 = vpop.permute.xlu1 %776  ;;  %v2074_v23 = vpop.permute.xlu2 %1046 }
 0x1f4   : > { %v809_v24 = vadd.f32 %v777_v22, %v1860_v34  ;;  %v1109_v61 = vpop.permute.xlu0 %1108 }
 0x1f6   : > { %v828_v26 = vadd.f32 %v1906_v51, %v809_v24 }
 0x1f8   : > { %845 = vst.msk [vmem:[%s1748_s22 + $0xe8] sm:$0xff] %vm829_vm5, %v828_v26 }
 0x1fb   : > { %v2080_v62 = vpop.permute.xlu1 %1044  ;;  %v761_v16 = vpop.permute.xlu2 %760 }
 0x1fc   : > { %v861_v56 = vpop.permute.xlu0 %860  ;;  %v801_v28 = vadd.f32 %v761_v16, %v1864_v36 }
 0x1fd   : > { %v904_v29 = vadd.f32 %v861_v56, %v1812_v20 }
 0x1fe   : > { %v820_v32 = vadd.f32 %v1906_v51, %v801_v28 }
 0x1ff   : > { %v923_v33 = vadd.f32 %v1933_v59, %v904_v29 }
 0x200   : > { %837 = vst.msk [vmem:[%s1748_s22 + $0x68] sm:$0xff] %vm829_vm5, %v820_v32 }
 0x201   : > { %959 = vrot.lane.b32.xlu2 %v923_v33, %s1613_s28  ;;  %v1170_v33 = vadd.f32 %v1927_v57, %v2004_v5 }
 0x203   : > { %v1129_v37 = vpop.permute.xlu1 %1128  ;;  %v2090_v38 = vpop.permute.xlu2 %1028 }
 0x204   : > { %v879_v44 = vpop.permute.xlu0 %878 }
 0x205   : > { %v913_v21 = vadd.f32 %v879_v44, %v1823_v25  ;;  %v1093_v39 = vadd.f32 %v1077_v35, %v879_v44  ;;  %v1068_v35 = vadd.f32 %v2067_v14, %v1812_v20  ;;  %v1171_v20 = vadd.f32 %v1927_v57, %v2057_v4 }
 0x207   : > { %v932_v41 = vadd.f32 %v1933_v59, %v913_v21  ;;  %v2094_v46 = vadd.f32 %v1129_v37, %v1093_v39  ;;  %v1153_v37 = vadd.f32 %v1109_v61, %v2030_v40  ;;  %v1084_v21 = vadd.f32 %v1068_v35, %v861_v56 }
 0x208   : > { %v1069_v39 = vadd.f32 %v2065_v0, %v1830_v27  ;;  %v1078_v35 = vadd.f32 %v2080_v62, %v1844_v30 }
 0x209   : > { %977 = vrot.lane.b32.xlu2 %v932_v41, %s1613_s28  ;;  %v1172_v5 = vadd.f32 %v1927_v57, %v1153_v37 }
 0x20b   : > { %v863_v8 = vpop.permute.xlu1 %862  ;;  %v1113_v6 = vpop.permute.xlu2 %1112 }
 0x20c   : > { %v775_v48 = vpop.permute.xlu0 %774  ;;  %v905_v49 = vadd.f32 %v863_v8, %v1830_v27  ;;  %v1085_v14 = vadd.f32 %v1069_v39, %v863_v8 }
 0x20d   : > { %v808_v50 = vadd.f32 %v775_v48, %v1844_v30 }
 0x20e   : > { %v924_v53 = vadd.f32 %v1933_v59, %v905_v49  ;;  %v1155_v0 = vadd.f32 %v1113_v6, %v1085_v14 }
 0x20f   : > { %v827_v54 = vadd.f32 %v1906_v51, %v808_v50 }
 0x210   : > { %961 = vrot.lane.b32.xlu0 %v924_v53, %s1613_s28  ;;  %v1174_v8 = vadd.f32 %v1927_v57, %v1155_v0 }
 0x211   : > { %844 = vst.msk [vmem:[%s1748_s22 + $0xe0] sm:$0xff] %vm829_vm5, %v827_v54 }
 0x213   : > { %v759_v25 = vpop.permute.xlu1 %758  ;;  %v2104_v55 = vpop.permute.xlu2 %864 }
 0x214   : > { %v1127_v60 = vpop.permute.xlu0 %1126  ;;  %v800_v63 = vadd.f32 %v759_v25, %v1846_v31  ;;  %v906_v43 = vadd.f32 %v2104_v55, %v1846_v31  ;;  %v1179_v25 = vadd.f32 %v1927_v57, %v2055_v2 }
 0x215   : > { %v1162_v27 = vadd.f32 %v1127_v60, %v2070_v19 }
 0x216   : > { %v819_v1 = vadd.f32 %v1906_v51, %v800_v63  ;;  %v925_v24 = vadd.f32 %v1933_v59, %v906_v43 }
 0x217   : > { %v1181_v4 = vadd.f32 %v1927_v57, %v1162_v27 }
 0x218   : > { %836 = vst.msk [vmem:[%s1748_s22 + $0x60] sm:$0xff] %vm829_vm5, %v819_v1  ;;  %v1070_v1 = vadd.f32 %v2090_v38, %v1846_v31 }
 0x21b   : > { %v1111_v10 = vpop.permute.xlu1 %1110  ;;  %v2110_v13 = vpop.permute.xlu2 %1034 }
 0x21c   : > { %v1031_v3 = vpop.permute.xlu0 %1030  ;;  %v1154_v41 = vadd.f32 %v1111_v10, %v1084_v21  ;;  %v1073_v31 = vadd.f32 %v2110_v13, %v1895_v47 }
 0x21d   : > { %v1071_v19 = vadd.f32 %v1031_v3, %v1864_v36 }
 0x21e   : > { %v1173_v56 = vadd.f32 %v1927_v57, %v1154_v41  ;;  %v1089_v38 = vadd.f32 %v1073_v31, %v1931_v58 }
 0x223   : > { %v851_v7 = vpop.permute.xlu1 %850  ;;  %v954_v9 = vpop.permute.xlu2 %953 }
 0x224   : > { %v849_v11 = vpop.permute.xlu0 %848  ;;  %v1097_v12 = vrot.slane %v851_v7, 1  ;;  %1466 = vst.msk [vmem:[%s1748_s22 + $0x18] sm:$0xff] %vm664_vm3, %v954_v9  ;;  %882 = vrot.lane.b32.xlu2 %v851_v7, %s1614_s29  ;;  %v1180_v7 = vadd.f32 %v1927_v57, %v2033_v45 }
 0x225   : > { %880 = vrot.lane.b32.xlu1 %v849_v11, %s1614_s29  ;;  %v1096_v22 = vrot.slane %v849_v11, 1 }
 0x226   : > { %v1100_v15 = vsel %vm697_vm4, %v1097_v12, 0.0 }
 0x227   : > { %1132 = vrot.lane.b32.xlu0 %v1100_v15, %s1615_s30  ;;  %v1098_v28 = vsel %vm697_vm4, %v1096_v22, %v1097_v12 }
 0x22b   : > { %v1202_v26 = vpop.permute.xlu2 %1201  ;;  %v765_v16 = vpop.permute.xlu1 %764 }
 0x22c   : > { %v867_v29 = vpop.permute.xlu0 %866  ;;  %v803_v32 = vadd.f32 %v765_v16, %v1895_v47  ;;  %1130 = vrot.lane.b32.xlu2 %v1098_v28, %s1615_s30 }
 0x22d   : > { %963 = vrot.lane.b32.xlu1 %v925_v24, %s1613_s28  ;;  %v1087_v6 = vadd.f32 %v1071_v19, %v867_v29 }
 0x22e   : > { %v822_v44 = vadd.f32 %v1906_v51, %v803_v32 }
 0x22f   : > { %1203 = vrot.lane.b32.xlu0 %v1170_v33, %s1613_s28  ;;  %v1079_v33 = vadd.f32 %v2074_v23, %v1860_v34 }
 0x230   : > { %839 = vst.msk [vmem:[%s1748_s22 + $0x88] sm:$0xff] %vm829_vm5, %v822_v44 }
 0x233   : > { %v972_v48 = vpop.permute.xlu2 %971  ;;  %v1033_v40 = vpop.permute.xlu1 %1032 }
 0x234   : > { %1475 = vst.msk [vmem:[%s1748_s22 + $0xb0] sm:$0xff] %vm664_vm3, %v972_v48  ;;  %v763_v61 = vpop.permute.xlu0 %762  ;;  %1207 = vrot.lane.b32.xlu2 %v1172_v5, %s1613_s28  ;;  %v1072_v60 = vadd.f32 %v1033_v40, %v1884_v42  ;;  %v1182_v40 = vadd.f32 %v1927_v57, %v2094_v46 }
 0x235   : > { %v802_v49 = vadd.f32 %v763_v61, %v1884_v42  ;;  %1205 = vrot.lane.b32.xlu1 %v1171_v20, %s1613_s28 }
 0x236   : > { %v1088_v2 = vadd.f32 %v1072_v60, %v1959_v17 }
 0x237   : > { %v821_v50 = vadd.f32 %v1906_v51, %v802_v49  ;;  %1209 = vrot.lane.b32.xlu0 %v1173_v56, %s1613_s28  ;;  %v907_v51 = vadd.f32 %v867_v29, %v1864_v36  ;;  %v1086_v36 = vadd.f32 %v1070_v1, %v2104_v55 }
 0x238   : > { %v1158_v45 = vadd.f32 %v1961_v18, %v1088_v2  ;;  %v1159_v18 = vadd.f32 %v1989_v52, %v1089_v38 }
 0x239   : > { %838 = vst.msk [vmem:[%s1748_s22 + $0x80] sm:$0xff] %vm829_vm5, %v821_v50  ;;  %v926_v10 = vadd.f32 %v1933_v59, %v907_v51 }
 0x23a   : > { %v1177_v12 = vadd.f32 %v1927_v57, %v1158_v45  ;;  %v1178_v58 = vadd.f32 %v1927_v57, %v1159_v18 }
 0x23b   : > { %v1117_v53 = vpop.permute.xlu1 %1116 }
 0x23c   : > { %v1115_v54 = vpop.permute.xlu0 %1114  ;;  %1225 = vrot.lane.b32.xlu2 %v1181_v4, %s1613_s28  ;;  %v1157_v63 = vadd.f32 %v1117_v53, %v1087_v6 }
 0x23d   : > { %1211 = vrot.lane.b32.xlu1 %v1174_v8, %s1613_s28  ;;  %v1156_v17 = vadd.f32 %v1115_v54, %v1086_v36 }
 0x23e   : > { %v1176_v9 = vadd.f32 %v1927_v57, %v1157_v63 }
 0x23f   : > { %1221 = vrot.lane.b32.xlu0 %v1179_v25, %s1613_s28  ;;  %v1175_v55 = vadd.f32 %v1927_v57, %v1156_v17 }
 0x243   : > { %v952_v3 = vpop.permute.xlu1 %951 }
 0x244   : > { %1465 = vst.msk [vmem:[%s1748_s22 + $0x10] sm:$0xff] %vm664_vm3, %v952_v3  ;;  %v968_v42 = vpop.permute.xlu0 %967  ;;  %965 = vrot.lane.b32.xlu2 %v926_v10, %s1613_s28 }
 0x245   : > { %1481 = vst.msk [vmem:[%s1748_s22 + $0x10] sm:$0xff] %vm829_vm5, %v1202_v26  ;;  %1223 = vrot.lane.b32.xlu1 %v1180_v7, %s1613_s28 }
 0x246   : > { %1473 = vst.msk [vmem:[%s1748_s22 + $0x90] sm:$0xff] %vm664_vm3, %v968_v42 }
 0x247   : > { %1215 = vrot.lane.b32.xlu0 %v1176_v9, %s1613_s28 }
 0x24b   : > { %v970_v11 = vpop.permute.xlu1 %969 }
 0x24c   : > { %1474 = vst.msk [vmem:[%s1748_s22 + $0x98] sm:$0xff] %vm664_vm3, %v970_v11  ;;  %v956_v47 = vpop.permute.xlu0 %955  ;;  %1213 = vrot.lane.b32.xlu2 %v1175_v55, %s1613_s28 }
 0x24d   : > { %1467 = vst.msk [vmem:[%s1748_s22 + $0x30] sm:$0xff] %vm664_vm3, %v956_v47  ;;  %1217 = vrot.lane.b32.xlu1 %v1177_v12, %s1613_s28 }
 0x253   : > { %v958_v13 = vpop.permute.xlu1 %957 }
 0x254   : > { %1468 = vst.msk [vmem:[%s1748_s22 + $0x38] sm:$0xff] %vm664_vm3, %v958_v13  ;;  %v974_v15 = vpop.permute.xlu0 %973  ;;  %1219 = vrot.lane.b32.xlu2 %v1178_v58, %s1613_s28 }
 0x255   : > { %1476 = vst.msk [vmem:[%s1748_s22 + $0xb8] sm:$0xff] %vm664_vm3, %v974_v15 }
 0x25b   : > { %v960_v43 = vpop.permute.xlu2 %959 }
 0x25c   : > { %1469 = vst.msk [vmem:[%s1748_s22 + $0x50] sm:$0xff] %vm664_vm3, %v960_v43 }
 0x262   : > { %v976_v22 = vpop.permute.xlu1 %975 }
 0x263   : > { %v978_v24 = vpop.permute.xlu2 %977  ;;  %1477 = vst.msk [vmem:[%s1748_s22 + $0xd0] sm:$0xff] %vm664_vm3, %v976_v22 }
 0x264   : > { %1478 = vst.msk [vmem:[%s1748_s22 + $0xd8] sm:$0xff] %vm664_vm3, %v978_v24 }
 0x27e   : > { %v883_v52 = vpop.permute.xlu2 %882 }
 0x27f   : > { %v915_v26 = vadd.f32 %v883_v52, %v1860_v34  ;;  %v1095_v21 = vadd.f32 %v1079_v33, %v883_v52 }
 0x281   : > { %v934_v16 = vadd.f32 %v1933_v59, %v915_v26 }
 0x282   : > { %v962_v28 = vpop.permute.xlu0 %961 }
 0x283   : > { %1470 = vst.msk [vmem:[%s1748_s22 + $0x58] sm:$0xff] %vm664_vm3, %v962_v28  ;;  %981 = vrot.lane.b32.xlu1 %v934_v16, %s1613_s28 }
 0x286   : > { %v1131_v29 = vpop.permute.xlu2 %1130 }
 0x28e   : > { %v1208_v32 = vpop.permute.xlu2 %1207 }
 0x28f   : > { %1484 = vst.msk [vmem:[%s1748_s22 + $0x38] sm:$0xff] %vm829_vm5, %v1208_v32 }
 0x296   : > { %v1226_v37 = vpop.permute.xlu2 %1225 }
 0x297   : > { %1493 = vst.msk [vmem:[%s1748_s22 + $0xd0] sm:$0xff] %vm829_vm5, %v1226_v37  ;;  %v881_v44 = vpop.permute.xlu1 %880 }
 0x298   : > { %v914_v39 = vadd.f32 %v881_v44, %v1844_v30  ;;  %v1094_v41 = vadd.f32 %v1078_v35, %v881_v44 }
 0x299   : > { %v1133_v5 = vpop.permute.xlu0 %1132 }
 0x29a   : > { %v933_v20 = vadd.f32 %v1933_v59, %v914_v39  ;;  %v1164_v14 = vadd.f32 %v1131_v29, %v1094_v41  ;;  %v1165_v48 = vadd.f32 %v1133_v5, %v1095_v21 }
 0x29c   : > { %v1184_v34 = vadd.f32 %v1927_v57, %v1165_v48  ;;  %979 = vrot.lane.b32.xlu0 %v933_v20, %s1613_s28  ;;  %v1183_v23 = vadd.f32 %v1927_v57, %v1164_v14 }
 0x29e   : > { %1229 = vrot.lane.b32.xlu1 %v1183_v23, %s1613_s28  ;;  %v966_v62 = vpop.permute.xlu2 %965  ;;  %1231 = vrot.lane.b32.xlu2 %v1184_v34, %s1613_s28 }
 0x29f   : > { %1472 = vst.msk [vmem:[%s1748_s22 + $0x78] sm:$0xff] %vm664_vm3, %v966_v62  ;;  %v964_v30 = vpop.permute.xlu1 %963 }
 0x2a0   : > { %1471 = vst.msk [vmem:[%s1748_s22 + $0x70] sm:$0xff] %vm664_vm3, %v964_v30 }
 0x2a1   : > { %v1204_v59 = vpop.permute.xlu0 %1203 }
 0x2a2   : > { %1482 = vst.msk [vmem:[%s1748_s22 + $0x18] sm:$0xff] %vm829_vm5, %v1204_v59 }
 0x2a4   : > { %1227 = vrot.lane.b32.xlu0 %v1182_v40, %s1613_s28 }
 0x2a6   : > { %v1214_v61 = vpop.permute.xlu2 %1213 }
 0x2a7   : > { %v1206_v56 = vpop.permute.xlu1 %1205  ;;  %1487 = vst.msk [vmem:[%s1748_s22 + $0x70] sm:$0xff] %vm829_vm5, %v1214_v61 }
 0x2a8   : > { %1483 = vst.msk [vmem:[%s1748_s22 + $0x30] sm:$0xff] %vm829_vm5, %v1206_v56 }
 0x2a9   : > { %v1210_v49 = vpop.permute.xlu0 %1209 }
 0x2aa   : > { %1485 = vst.msk [vmem:[%s1748_s22 + $0x50] sm:$0xff] %vm829_vm5, %v1210_v49 }
 0x2ae   : > { %v1220_v27 = vpop.permute.xlu2 %1219 }
 0x2af   : > { %v1212_v0 = vpop.permute.xlu1 %1211  ;;  %1490 = vst.msk [vmem:[%s1748_s22 + $0x98] sm:$0xff] %vm829_vm5, %v1220_v27 }
 0x2b0   : > { %1486 = vst.msk [vmem:[%s1748_s22 + $0x58] sm:$0xff] %vm829_vm5, %v1212_v0 }
 0x2b1   : > { %v1222_v57 = vpop.permute.xlu0 %1221 }
 0x2b2   : > { %1491 = vst.msk [vmem:[%s1748_s22 + $0xb0] sm:$0xff] %vm829_vm5, %v1222_v57 }
 0x2b7   : > { %v1224_v46 = vpop.permute.xlu1 %1223 }
 0x2b8   : > { %1492 = vst.msk [vmem:[%s1748_s22 + $0xb8] sm:$0xff] %vm829_vm5, %v1224_v46 }
 0x2b9   : > { %v1216_v50 = vpop.permute.xlu0 %1215 }
 0x2ba   : > { %1488 = vst.msk [vmem:[%s1748_s22 + $0x78] sm:$0xff] %vm829_vm5, %v1216_v50 }
 0x2bf   : > { %v1218_v4 = vpop.permute.xlu1 %1217 }
 0x2c0   : > { %1489 = vst.msk [vmem:[%s1748_s22 + $0x90] sm:$0xff] %vm829_vm5, %v1218_v4 }
 0x2f5   : > { %v982_v8 = vpop.permute.xlu1 %981 }
 0x2f6   : > { %1480 = vst.msk [vmem:[%s1748_s22 + $0xf8] sm:$0xff] %vm664_vm3, %v982_v8 }
 0x2f8   : > { %v1232_v53 = vpop.permute.xlu2 %1231 }
 0x2f9   : > { %1496 = vst.msk [vmem:[%s1748_s22 + $0xf8] sm:$0xff] %vm829_vm5, %v1232_v53 }
 0x30e   : > { %v980_v54 = vpop.permute.xlu0 %979 }
 0x30f   : > { %1479 = vst.msk [vmem:[%s1748_s22 + $0xf0] sm:$0xff] %vm664_vm3, %v980_v54 }
 0x310   : > { %v1230_v25 = vpop.permute.xlu1 %1229 }
 0x311   : > { %1495 = vst.msk [vmem:[%s1748_s22 + $0xf0] sm:$0xff] %vm829_vm5, %v1230_v25 }
 0x316   : > { %v1228_v19 = vpop.permute.xlu0 %1227 }
 0x317   : > { %1494 = vst.msk [vmem:[%s1748_s22 + $0xd8] sm:$0xff] %vm829_vm5, %v1228_v19 }
 0x318 PF: > { %s16_s25 = sadd.s32 1, %s1606_s25   ;;  %s2281_s21 = smov %s1598_s23 }
 0x319   : > { %p13_p9 = scmp.ge.s32.totalorder %s16_s25, 6   ;;  %s2282_s22 = smov %s1602_s24 }
 0x31a   : > { %s2283_s23 = smov %s2286_s26  ;;  %s2284_s24 = smov %s2290_s27 }
 0x31b   :  { %15 = sbr.rel (!%p13_p9) target bundleno = 3 (0x3), region = 78 }

</bundles_post_ra>
